<compile_context>
chip_gen: v7x
topology: tpu7x:2x2x1
jax: 0.10.0
libtpu: 0.0.40
codegen_flags: <defaults>
</compile_context>

<pallas_src>
import functools

import jax
import jax.numpy as jnp
from jax.experimental import pallas as pl
from jax.experimental.pallas import tpu as pltpu


def _round_up(n: int, m: int) -> int:
    return ((n + m - 1) // m) * m


def _mlc1d_kernel(x_ref, w1_ref, b1_ref, w2_ref, b2_ref, o_ref, *, K, tt, pad, T_real):
    # x_ref : (T_ext, Dp)   haloed, feature-padded activations for this batch row
    # w1_ref: (K, Dp, Hp)   conv1 taps, transposed to (in, out)
    # b1_ref: (1, Hp)
    # w2_ref: (K, Hp, Dp)   conv2 taps, transposed to (in, out)
    # b2_ref: (1, Dp)
    # o_ref : (tt, Dp)      output time-tile
    Hp = w1_ref.shape[-1]
    Dp = o_ref.shape[-1]
    tt_ext = tt + K - 1                      # haloed rows needed by conv2

    ti = pl.program_id(1)
    t0 = pl.multiple_of(ti * tt, 8)          # tile start (rows), 8-aligned

    # Haloed activation window for this tile: rows [t0, t0 + tt + 2*(K-1)).
    xw = x_ref[pl.ds(t0, tt + 2 * (K - 1)), :]

    # ---- conv1 (K shifted matmuls) + bias + relu, on the haloed window ----
    acc1 = jnp.dot(xw[0:tt_ext, :], w1_ref[0], preferred_element_type=jnp.float32)
    for j in range(1, K):
        acc1 = acc1 + jnp.dot(xw[j:j + tt_ext, :], w1_ref[j],
                              preferred_element_type=jnp.float32)
    h = jnp.maximum(acc1 + b1_ref[...], 0.0)          # (tt_ext, Hp) f32

    # Zero rows whose (virtual) time index lies outside [0, T): conv2 must see
    # zero padding there, exactly like torch's Conv1d zero-pads its input.
    if pad > 0:
        r = jax.lax.broadcasted_iota(jnp.int32, (tt_ext, 1), 0)
        t_idx = t0 - pad + r
        h = jnp.where((t_idx >= 0) & (t_idx < T_real), h, 0.0)

    # dropout (inference) == identity.

    # ---- conv2 (K shifted matmuls) + bias ----
    h_in = h.astype(w2_ref.dtype)
    acc2 = jnp.dot(h_in[0:tt, :], w2_ref[0], preferred_element_type=jnp.float32)
    for j in range(1, K):
        acc2 = acc2 + jnp.dot(h_in[j:j + tt, :], w2_ref[j],
                              preferred_element_type=jnp.float32)
    o_ref[...] = (acc2 + b2_ref[...]).astype(o_ref.dtype)


def prepare_conv_params(w1, b1, w2, b2):
    """Rearrange torch Conv1d params ONCE, outside the per-call hot path.

    w1: (hidden, in, K), b1: (hidden,), w2: (in, hidden, K), b2: (in,)
    Returns per-tap (in, out) matrices zero-padded so every lane dim is a
    multiple of 128 (lane-dense MXU tiles, unmasked vst stores)."""
    H, D, K = w1.shape
    assert w2.shape == (D, H, K)
    assert K % 2 == 1, "only odd kernel_size gives 'same' length in the torch module"
    Dp = _round_up(D, 128)
    Hp = _round_up(H, 128)
    w1_t = jnp.transpose(w1, (2, 1, 0))                      # (K, D, H)
    w2_t = jnp.transpose(w2, (2, 1, 0))                      # (K, H, D)
    w1_p = jnp.zeros((K, Dp, Hp), w1.dtype).at[:, :D, :H].set(w1_t)
    w2_p = jnp.zeros((K, Hp, Dp), w2.dtype).at[:, :H, :D].set(w2_t)
    b1_p = jnp.zeros((1, Hp), b1.dtype).at[0, :H].set(b1)
    b2_p = jnp.zeros((1, Dp), b2.dtype).at[0, :D].set(b2)
    return w1_p, b1_p, w2_p, b2_p


def multi_layered_conv1d(x, w1_p, b1_p, w2_p, b2_p, *, tt=256):
    """x: (B, T, in_chans); params from prepare_conv_params(). Returns (B, T, in_chans)."""
    B, T, D = x.shape
    K, Dp, Hp = w1_p.shape
    assert D <= Dp and w2_p.shape == (K, Hp, Dp)
    pad = (K - 1) // 2
    halo = K - 1

    # Token (time) tile: big (default 256) but never bigger than the padded T;
    # always a multiple of 8 so every grid step is a full, unmasked MXU tile.
    tt = max(8, min(_round_up(tt, 8), _round_up(T, 8)))
    nT = pl.cdiv(T, tt)
    T_round = nT * tt
    T_ext = T_round + 2 * halo

    # Zero-pad: features -> Dp (lane multiple of 128), time -> T_round plus a
    # (K-1)-row halo on each side so every in-kernel window load is in bounds.
    x_pad = jnp.zeros((B, T_ext, Dp), x.dtype).at[:, halo:halo + T, :D].set(x)

    kernel = functools.partial(_mlc1d_kernel, K=K, tt=tt, pad=pad, T_real=T)

    out_pad = pl.pallas_call(
        kernel,
        out_shape=jax.ShapeDtypeStruct((B, T_round, Dp), x.dtype),
        grid_spec=pltpu.PrefetchScalarGridSpec(
            num_scalar_prefetch=0,
            grid=(B, nT),
            in_specs=[
                # Full haloed time axis of one batch row (re-DMAed only when b changes).
                pl.BlockSpec((None, T_ext, Dp), lambda b, t: (b, 0, 0)),
                # Weights/biases: whole arrays resident in VMEM, single-buffered.
                pl.BlockSpec(memory_space=pltpu.MemorySpace.VMEM),   # w1 taps
                pl.BlockSpec(memory_space=pltpu.MemorySpace.VMEM),   # b1
                pl.BlockSpec(memory_space=pltpu.MemorySpace.VMEM),   # w2 taps
                pl.BlockSpec(memory_space=pltpu.MemorySpace.VMEM),   # b2
            ],
            out_specs=pl.BlockSpec((None, tt, Dp), lambda b, t: (b, t, 0)),
        ),
        compiler_params=pltpu.CompilerParams(
            dimension_semantics=("parallel", "parallel"),
            vmem_limit_bytes=48 * 1024 * 1024,   # > default scoped limit, < v7x 64 MiB
        ),
    )(x_pad, w1_p, b1_p, w2_p, b2_p)

    return out_pad[:, :T, :D]


def _reference(x, w1, b1, w2, b2):
    """Pure-JAX reference of MultiLayeredConv1d.forward (inference)."""
    K = w1.shape[-1]
    pad = (K - 1) // 2

    def conv1d(inp, w, b):
        _, T, _ = inp.shape
        xp = jnp.pad(inp, ((0, 0), (pad, pad), (0, 0)))
        y = sum(jnp.einsum("bti,oi->bto", xp[:, j:j + T, :], w[:, :, j])
                for j in range(K))
        return y + b

    h = jnp.maximum(conv1d(x, w1, b1), 0.0)
    return conv1d(h, w2, b2)


if __name__ == "__main__":
    # Small deterministic example consistent with the module:
    # batch=2, seq=8, in_chans=16, hidden_chans=32, kernel_size=3, dropout=0 (inference).
    B, T, D, H, K = 2, 8, 16, 32, 3
    key = jax.random.PRNGKey(0)
    kx, kw1, kb1, kw2, kb2 = jax.random.split(key, 5)

    x = jax.random.normal(kx, (B, T, D), dtype=jnp.float32)
    # nn.Conv1d(in, hidden, K): weight (hidden, in, K), bias (hidden,)
    w1 = jax.random.normal(kw1, (H, D, K), dtype=jnp.float32) * 0.1
    b1 = jax.random.normal(kb1, (H,), dtype=jnp.float32) * 0.1
    # nn.Conv1d(hidden, in, K): weight (in, hidden, K), bias (in,)
    w2 = jax.random.normal(kw2, (D, H, K), dtype=jnp.float32) * 0.1
    b2 = jax.random.normal(kb2, (D,), dtype=jnp.float32) * 0.1

    params = prepare_conv_params(w1, b1, w2, b2)   # one-time, outside hot path
    out = multi_layered_conv1d(x, *params)
    out = jax.block_until_ready(out)

    ref = _reference(x, w1, b1, w2, b2)
    assert out.shape == (B, T, D)
    # Tolerance covers default-precision (bf16-pass) MXU f32 matmuls on TPU.
    assert jnp.allclose(out, ref, atol=5e-2, rtol=5e-2), \
        float(jnp.max(jnp.abs(out - ref)))

    print("KERNEL_OK")
</pallas_src>

<mosaic_0001>
module attributes {stable_mosaic.version = 11 : i64} {
  func.func @_mlc1d_kernel(%arg0: i32, %arg1: i32, %arg2: memref<1x12x128xf32, #tpu.memory_space<vmem>>, %arg3: memref<3x128x128xf32, #tpu.memory_space<vmem>>, %arg4: memref<1x128xf32, #tpu.memory_space<vmem>>, %arg5: memref<3x128x128xf32, #tpu.memory_space<vmem>>, %arg6: memref<1x128xf32, #tpu.memory_space<vmem>>, %arg7: memref<1x8x128xf32, #tpu.memory_space<vmem>>) attributes {dimension_semantics = [#tpu.dimension_semantics<parallel>, #tpu.dimension_semantics<parallel>], iteration_bounds = array<i64: 2, 1>, scalar_prefetch = 0 : i64, scratch_operands = 0 : i64, tpu.core_type = #tpu.core_type<tc>, window_params = [{transform_indices = @transform_0, window_bounds = array<i64: 1, 12, 128>}, {pipeline_mode = #tpu.pipeline_mode<synchronous>, transform_indices = @transform_1, window_bounds = array<i64: 3, 128, 128>}, {pipeline_mode = #tpu.pipeline_mode<synchronous>, transform_indices = @transform_2, window_bounds = array<i64: 1, 128>}, {pipeline_mode = #tpu.pipeline_mode<synchronous>, transform_indices = @transform_3, window_bounds = array<i64: 3, 128, 128>}, {pipeline_mode = #tpu.pipeline_mode<synchronous>, transform_indices = @transform_4, window_bounds = array<i64: 1, 128>}, {transform_indices = @transform_5, window_bounds = array<i64: 1, 8, 128>}]} {
    %c8_i32 = arith.constant 8 : i32
    %0 = arith.muli %arg1, %c8_i32 : i32
    %1 = tpu.assume_multiple %0, 8 : i32
    %c0 = arith.constant 0 : index
    %2 = arith.index_cast %1 : i32 to index
    %c0_0 = arith.constant 0 : index
    %3 = vector.load %arg2[%c0, %2, %c0_0] : memref<1x12x128xf32, #tpu.memory_space<vmem>>, vector<1x12x128xf32>
    %4 = vector.shape_cast %3 : vector<1x12x128xf32> to vector<12x128xf32>
    %5 = vector.extract_strided_slice %4 {offsets = [0, 0], sizes = [10, 128], strides = [1, 1]} : vector<12x128xf32> to vector<10x128xf32>
    %c0_1 = arith.constant 0 : index
    %c0_2 = arith.constant 0 : index
    %c0_3 = arith.constant 0 : index
    %6 = vector.load %arg3[%c0_1, %c0_2, %c0_3] : memref<3x128x128xf32, #tpu.memory_space<vmem>>, vector<1x128x128xf32>
    %7 = vector.shape_cast %6 : vector<1x128x128xf32> to vector<128x128xf32>
    %cst = arith.constant dense<0.000000e+00> : vector<10x128xf32>
    %8 = tpu.matmul %5, %7, %cst {dimension_numbers = #tpu.dot_dimension_numbers<[1], [0], [0], [1], [0, 0, 1, 1], [], []>} : vector<10x128xf32>, vector<128x128xf32>, vector<10x128xf32> -> vector<10x128xf32>
    %9 = vector.extract_strided_slice %4 {offsets = [1, 0], sizes = [10, 128], strides = [1, 1]} : vector<12x128xf32> to vector<10x128xf32>
    %c1 = arith.constant 1 : index
    %c0_4 = arith.constant 0 : index
    %c0_5 = arith.constant 0 : index
    %10 = vector.load %arg3[%c1, %c0_4, %c0_5] : memref<3x128x128xf32, #tpu.memory_space<vmem>>, vector<1x128x128xf32>
    %11 = vector.shape_cast %10 : vector<1x128x128xf32> to vector<128x128xf32>
    %cst_6 = arith.constant dense<0.000000e+00> : vector<10x128xf32>
    %12 = tpu.matmul %9, %11, %cst_6 {dimension_numbers = #tpu.dot_dimension_numbers<[1], [0], [0], [1], [0, 0, 1, 1], [], []>} : vector<10x128xf32>, vector<128x128xf32>, vector<10x128xf32> -> vector<10x128xf32>
    %13 = arith.addf %8, %12 : vector<10x128xf32>
    %14 = vector.extract_strided_slice %4 {offsets = [2, 0], sizes = [10, 128], strides = [1, 1]} : vector<12x128xf32> to vector<10x128xf32>
    %c2 = arith.constant 2 : index
    %c0_7 = arith.constant 0 : index
    %c0_8 = arith.constant 0 : index
    %15 = vector.load %arg3[%c2, %c0_7, %c0_8] : memref<3x128x128xf32, #tpu.memory_space<vmem>>, vector<1x128x128xf32>
    %16 = vector.shape_cast %15 : vector<1x128x128xf32> to vector<128x128xf32>
    %cst_9 = arith.constant dense<0.000000e+00> : vector<10x128xf32>
    %17 = tpu.matmul %14, %16, %cst_9 {dimension_numbers = #tpu.dot_dimension_numbers<[1], [0], [0], [1], [0, 0, 1, 1], [], []>} : vector<10x128xf32>, vector<128x128xf32>, vector<10x128xf32> -> vector<10x128xf32>
    %18 = arith.addf %13, %17 : vector<10x128xf32>
    %c0_10 = arith.constant 0 : index
    %c0_11 = arith.constant 0 : index
    %19 = vector.load %arg4[%c0_10, %c0_11] : memref<1x128xf32, #tpu.memory_space<vmem>>, vector<1x128xf32>
    %20 = vector.broadcast %19 : vector<1x128xf32> to vector<10x128xf32>
    %21 = arith.addf %18, %20 : vector<10x128xf32>
    %cst_12 = arith.constant 0.000000e+00 : f32
    %22 = vector.broadcast %cst_12 : f32 to vector<10x128xf32>
    %23 = arith.maximumf %21, %22 : vector<10x128xf32>
    %24 = tpu.iota {dimensions = array<i32: 0>} : vector<10x1xi32>
    %c1_i32 = arith.constant 1 : i32
    %25 = arith.subi %1, %c1_i32 : i32
    %26 = vector.broadcast %25 : i32 to vector<10x1xi32>
    %27 = arith.addi %26, %24 : vector<10x1xi32>
    %c0_i32 = arith.constant 0 : i32
    %28 = vector.broadcast %c0_i32 : i32 to vector<10x1xi32>
    %29 = arith.cmpi sge, %27, %28 : vector<10x1xi32>
    %c8_i32_13 = arith.constant 8 : i32
    %30 = vector.broadcast %c8_i32_13 : i32 to vector<10x1xi32>
    %31 = arith.cmpi slt, %27, %30 : vector<10x1xi32>
    %32 = arith.andi %29, %31 : vector<10x1xi1>
    %cst_14 = arith.constant 0.000000e+00 : f32
    %33 = vector.shape_cast %32 : vector<10x1xi1> to vector<10x1xi1>
    %34 = vector.broadcast %33 : vector<10x1xi1> to vector<10x128xi1>
    %35 = vector.broadcast %cst_14 : f32 to vector<10x128xf32>
    %36 = arith.select %34, %23, %35 : vector<10x128xi1>, vector<10x128xf32>
    %37 = vector.extract_strided_slice %36 {offsets = [0, 0], sizes = [8, 128], strides = [1, 1]} : vector<10x128xf32> to vector<8x128xf32>
    %c0_15 = arith.constant 0 : index
    %c0_16 = arith.constant 0 : index
    %c0_17 = arith.constant 0 : index
    %38 = vector.load %arg5[%c0_15, %c0_16, %c0_17] : memref<3x128x128xf32, #tpu.memory_space<vmem>>, vector<1x128x128xf32>
    %39 = vector.shape_cast %38 : vector<1x128x128xf32> to vector<128x128xf32>
    %cst_18 = arith.constant dense<0.000000e+00> : vector<8x128xf32>
    %40 = tpu.matmul %37, %39, %cst_18 {dimension_numbers = #tpu.dot_dimension_numbers<[1], [0], [0], [1], [0, 0, 1, 1], [], []>} : vector<8x128xf32>, vector<128x128xf32>, vector<8x128xf32> -> vector<8x128xf32>
    %41 = vector.extract_strided_slice %36 {offsets = [1, 0], sizes = [8, 128], strides = [1, 1]} : vector<10x128xf32> to vector<8x128xf32>
    %c1_19 = arith.constant 1 : index
    %c0_20 = arith.constant 0 : index
    %c0_21 = arith.constant 0 : index
    %42 = vector.load %arg5[%c1_19, %c0_20, %c0_21] : memref<3x128x128xf32, #tpu.memory_space<vmem>>, vector<1x128x128xf32>
    %43 = vector.shape_cast %42 : vector<1x128x128xf32> to vector<128x128xf32>
    %cst_22 = arith.constant dense<0.000000e+00> : vector<8x128xf32>
    %44 = tpu.matmul %41, %43, %cst_22 {dimension_numbers = #tpu.dot_dimension_numbers<[1], [0], [0], [1], [0, 0, 1, 1], [], []>} : vector<8x128xf32>, vector<128x128xf32>, vector<8x128xf32> -> vector<8x128xf32>
    %45 = arith.addf %40, %44 : vector<8x128xf32>
    %46 = vector.extract_strided_slice %36 {offsets = [2, 0], sizes = [8, 128], strides = [1, 1]} : vector<10x128xf32> to vector<8x128xf32>
    %c2_23 = arith.constant 2 : index
    %c0_24 = arith.constant 0 : index
    %c0_25 = arith.constant 0 : index
    %47 = vector.load %arg5[%c2_23, %c0_24, %c0_25] : memref<3x128x128xf32, #tpu.memory_space<vmem>>, vector<1x128x128xf32>
    %48 = vector.shape_cast %47 : vector<1x128x128xf32> to vector<128x128xf32>
    %cst_26 = arith.constant dense<0.000000e+00> : vector<8x128xf32>
    %49 = tpu.matmul %46, %48, %cst_26 {dimension_numbers = #tpu.dot_dimension_numbers<[1], [0], [0], [1], [0, 0, 1, 1], [], []>} : vector<8x128xf32>, vector<128x128xf32>, vector<8x128xf32> -> vector<8x128xf32>
    %50 = arith.addf %45, %49 : vector<8x128xf32>
    %c0_27 = arith.constant 0 : index
    %c0_28 = arith.constant 0 : index
    %51 = vector.load %arg6[%c0_27, %c0_28] : memref<1x128xf32, #tpu.memory_space<vmem>>, vector<1x128xf32>
    %52 = vector.broadcast %51 : vector<1x128xf32> to vector<8x128xf32>
    %53 = arith.addf %50, %52 : vector<8x128xf32>
    %c0_29 = arith.constant 0 : index
    %c0_30 = arith.constant 0 : index
    %c0_31 = arith.constant 0 : index
    %54 = vector.load %arg7[%c0_29, %c0_30, %c0_31] : memref<1x8x128xf32, #tpu.memory_space<vmem>>, vector<1x8x128xf32>
    %55 = vector.shape_cast %54 : vector<1x8x128xf32> to vector<8x128xf32>
    %56 = vector.shape_cast %53 : vector<8x128xf32> to vector<1x8x128xf32>
    tpu.vector_store %arg7[%c0_29, %c0_30, %c0_31], %56 {strides = array<i32>} : memref<1x8x128xf32, #tpu.memory_space<vmem>>, vector<1x8x128xf32>,
    return
  }
  func.func @transform_0(%arg0: i32, %arg1: i32) -> (i32, i32, i32) {
    %c0_i32 = arith.constant 0 : i32
    %c0_i32_0 = arith.constant 0 : i32
    %c0_i32_1 = arith.constant 0 : i32
    return %arg0, %c0_i32, %c0_i32_0 : i32, i32, i32
  }
  func.func @transform_1(%arg0: i32, %arg1: i32) -> (i32, i32, i32) {
    %c0_i32 = arith.constant 0 : i32
    %c0_i32_0 = arith.constant 0 : i32
    %c0_i32_1 = arith.constant 0 : i32
    %c0_i32_2 = arith.constant 0 : i32
    return %c0_i32, %c0_i32_0, %c0_i32_1 : i32, i32, i32
  }
  func.func @transform_2(%arg0: i32, %arg1: i32) -> (i32, i32) {
    %c0_i32 = arith.constant 0 : i32
    %c0_i32_0 = arith.constant 0 : i32
    %c0_i32_1 = arith.constant 0 : i32
    return %c0_i32, %c0_i32_0 : i32, i32
  }
  func.func @transform_3(%arg0: i32, %arg1: i32) -> (i32, i32, i32) {
    %c0_i32 = arith.constant 0 : i32
    %c0_i32_0 = arith.constant 0 : i32
    %c0_i32_1 = arith.constant 0 : i32
    %c0_i32_2 = arith.constant 0 : i32
    return %c0_i32, %c0_i32_0, %c0_i32_1 : i32, i32, i32
  }
  func.func @transform_4(%arg0: i32, %arg1: i32) -> (i32, i32) {
    %c0_i32 = arith.constant 0 : i32
    %c0_i32_0 = arith.constant 0 : i32
    %c0_i32_1 = arith.constant 0 : i32
    return %c0_i32, %c0_i32_0 : i32, i32
  }
  func.func @transform_5(%arg0: i32, %arg1: i32) -> (i32, i32, i32) {
    %c0_i32 = arith.constant 0 : i32
    %c0_i32_0 = arith.constant 0 : i32
    return %arg0, %arg1, %c0_i32 : i32, i32, i32
  }
}

</mosaic_0001>

<bundles_post_ra>
// kernel: tpu_custom_call.1
= control target key start
LH: loop header
LB: loop body
LE: loop exit
PB: predicated region body
PF: predicated region fallthrough
CT: control target
= control target key end

     0   :  { %10 = vsyncpa [#allocation3], 0  ;;  %s1996_s0 = inlined_call_operand.vmem [shape: f32[2,12,128], index: 0, kind: input, shape index: {}]   ;;  %s1997_s1 = inlined_call_operand.hbm [shape: f32[3,128,128], index: 1, kind: input, shape index: {}]   ;;  %s1998_s2 = inlined_call_operand.vmem [shape: f32[1,128], index: 2, kind: input, shape index: {}]   ;;  %s1999_s3 = inlined_call_operand.hbm [shape: f32[3,128,128], index: 3, kind: input, shape index: {}]   ;;  %s2000_s4 = inlined_call_operand.vmem [shape: f32[1,128], index: 4, kind: input, shape index: {}]   ;;  %s2001_s5 = inlined_call_operand.hbm [shape: f32[2,8,128], index: 5, kind: output, shape index: {}]  }
   0x1   :  { %11 = vsyncpa [#allocation6], 0 }
   0x2   :  { %12 = vsyncpa [#allocation4], 0 }
   0x3   :  { %14 = vsyncpa [#allocation4 + $0x1], 0  ;;  %s1749_s18 = smov 0   ;;  %s1751_s19 = smov 0  }
   0x4   :  { %s1753_s20 = smov 0   ;;  %s1755_s21 = smov 0  }
   0x5   :  { %s1757_s22 = smov 0   ;;  %s1759_s23 = smov 0  }
   0x6 LB: > { %s979_s24 = sadd.s32 4294967295, %s1709_s23   ;;  %s980_s25 = sadd.s32 4294967294, %s1709_s23   ;;  %s1709_s23 = sphi %s1759_s23, %s20_s23   ;;  %s1705_s22 = sphi %s1757_s22, %s2022_s22   ;;  %s1701_s21 = sphi %s1755_s21, %s2021_s21   ;;  %s1697_s20 = sphi %s1753_s20, %s2020_s20   ;;  %s1693_s19 = sphi %s1751_s19, %s2019_s19   ;;  %s1689_s18 = sphi %s1749_s18, %s2018_s18  }
   0x7   : > { %s32_s26 = sadd.s32 1, %s1705_s22  ;;  %s151_s27 = sadd.s32 1, %s1697_s20 }
   0x8   : > { %p34_p0 = scmp.ge.s32.totalorder %s32_s26, 2  ;;  %p161_p1 = scmp.ne.s32.totalorder %s1697_s20, %s1693_s19 }
   0x9   : > { %p162_p2 = scmp.eq.s32.totalorder %s979_s24, 1  ;;  %p167_p3 = scmp.ne.s32.totalorder %s1693_s19, %s1689_s18 }
   0xa   : > { %s2024_s26 = smov (%p34_p0, %s32_s26), 0  ;;  %p168_p5 = scmp.eq.s32.totalorder %s980_s25, 1 }
   0xb   : > { %2007 = sst [smem:[#allocation11_spill]] %s2024_s26  ;;  %p1789_p4 = por %p162_p2, %p161_p1 }
   0xc   : > { %s146_s29 = ssub.s32 %s1705_s22, %s2024_s26  ;;  %p981_p6 = scmp.ge.s32.totalorder %s1709_s23, 1 }
   0xd   : > { %s2008_s28 = scalar_select %p1789_p4, 1, 0 }
   0xe   : > { %p149_p7 = scmp.eq.s32.totalorder %s146_s29, 0  ;;  %p1796_p8 = por %p168_p5, %p167_p3 }
   0xf   : > { %p175_p9 = scmp.lt.s32.totalorder %s1709_s23, 3  ;;  %p1808_p11 = scmp.eq.s32.totalorder %s979_s24, 0 }
  0x10   : > { %s2009_s30 = scalar_select %p1796_p8, 1, 0 }
  0x11   : > { %s1802_s6 = scalar_select %p149_p7, %s1697_s20, %s151_s27  }
  0x12   : > { %p1804_p10 = pnand %p981_p6, %p175_p9  ;;  %s1711_s9 = smov [#allocation2]  }
  0x13   : > { %s2011_s8 = scalar_select %p1808_p11, 1, 0 }
  0x14   : > { %s2010_s7 = scalar_select %p1804_p10, 1, 0 }
  0x15   : > { %p1496_p12 = pneg %p1804_p10  ;;  %s187_s10 = sshll.u32 %s1711_s9, 4  ;;  %s188_s10 = int_to_ptr.vmem [resolvable:$true] %s187_s10 }
  0x16   : > { %s1712_s12 = smov [#allocation5]   ;;  %s1567_s16 = scalar_lea.hbm %s1997_s1, 6144 }
  0x17   : > { %p1816_p13 = pnand %p1808_p11, %p1496_p12  ;;  %s203_s13 = sshll.u32 %s1712_s12, 4  ;;  %s1820_s13 = int_to_ptr.vmem [resolvable:$true] %s203_s13 }
  0x18   : > { %p1568_p0 = scmp.ne.s32.totalorder %s1997_s1, %s1567_s16  ;;  %p1574_p5 = scmp.lt.u32.totalorder %s1567_s16, %s1997_s1 }
  0x19   : > { %p1569_p1 = pneg %p1816_p13 }
  0x1b   : > { %p1570_p2 = pnand %p1569_p1, %p1568_p0 }
  0x1d   : > { %p1571_p3 = pneg %p1570_p2 }
  0x1f   : > { %p1576_p6 = pnand %p1574_p5, %p1571_p3 }
  0x21   : > { %1579 = shalt.err (!%p1576_p6)
}
  0x22   : > { %s1580_s29 = scalar_lea.vmem %s188_s10, 6144  ;;  %p1588_p8 = scmp.lt.s32.totalorder %s188_s10, %s188_s10 }
  0x23   : > { %p1581_p7 = scmp.ne.s32.totalorder %s188_s10, %s1580_s29  ;;  %p1589_p4 = scmp.lt.s32.totalorder %s1580_s29, %s1580_s29 }
  0x25   : > { %p1583_p9 = pnand %p1581_p7, %p1569_p1  ;;  %p1590_p11 = por %p1589_p4, %p1588_p8 }
  0x27   : > { %p1584_p12 = pneg %p1583_p9 }
  0x29   : > { %p1591_p10 = pnand %p1590_p11, %p1584_p12 }
  0x2b   : > { %1594 = shalt.err (!%p1591_p10)
}
  0x2c   : > { %s1713_s9 = smov 128   ;;  %s1714_s12 = smov 8  }
  0x2d   : > { %1499 = dma.hbm_to_vmem [thread:$0]  (!%p1816_p13), %s1997_s1, 6144, %s188_s10, [#allocation3], %s1713_s9, %s1713_s9, %s1714_s12  }
  0x2e   : > { %s1595_s24 = scalar_lea.hbm %s1999_s3, 6144 }
  0x2f   : > { %p1596_p0 = scmp.ne.s32.totalorder %s1999_s3, %s1595_s24  ;;  %p1602_p10 = scmp.lt.u32.totalorder %s1595_s24, %s1999_s3 }
  0x31   : > { %p1598_p4 = pnand %p1596_p0, %p1569_p1 }
  0x33   : > { %p1599_p8 = pneg %p1598_p4 }
  0x35   : > { %p1604_p11 = pnand %p1602_p10, %p1599_p8 }
  0x37   : > { %1607 = shalt.err (!%p1604_p11)
}
  0x38   : > { %s1608_s10 = scalar_lea.vmem %s1820_s13, 6144  ;;  %p1616_p6 = scmp.lt.s32.totalorder %s1820_s13, %s1820_s13 }
  0x39   : > { %p1609_p2 = scmp.ne.s32.totalorder %s1820_s13, %s1608_s10  ;;  %p1617_p7 = scmp.lt.s32.totalorder %s1608_s10, %s1608_s10 }
  0x3b   : > { %p1611_p3 = pnand %p1609_p2, %p1569_p1  ;;  %p1618_p9 = por %p1617_p7, %p1616_p6 }
  0x3d   : > { %p1612_p5 = pneg %p1611_p3 }
  0x3f   : > { %p1619_p12 = pnand %p1618_p9, %p1612_p5 }
  0x41   : > { %1622 = shalt.err (!%p1619_p12)
}
  0x42   : > { %1502 = dma.hbm_to_vmem [thread:$0]  (!%p1816_p13), %s1999_s3, 6144, %s1820_s13, [#allocation6], %s1713_s9, %s1713_s9, %s1714_s12  }
  0x43   : > { %p2013_p0 = scmp.ne.s32.totalorder %s2010_s7, 0 }
  0x44   : > { %p2014_p4 = scmp.ne.s32.totalorder (!%p2013_p0), %s2011_s8, 0 }
  0x45   : > { %230 = sbr.rel (%p2013_p0) target bundleno = 693 (0x2b5), region = 40 }
  0x4c   : > { %1676 = dma.done.wait (%p2014_p4), [#allocation3], 6144  }
  0x4d   : > { %1678 = vsyncadd (%p2014_p4), [#allocation3], 4294961152 }
  0x4e   : > { %1680 = dma.done.wait (%p2014_p4), [#allocation6], 6144  }
  0x4f   : > { %1682 = vsyncadd (%p2014_p4), [#allocation6], 4294961152  ;;  %p262_p1 = scmp.lt.s32.totalorder %s1701_s21, 1  ;;  %v1715_v0 = vmov 0.0|0.0   ;;  %v288_v1 = vld [vmem:[#allocation2 + $0x80] sm:$0xff]  ;;  %v289_v2 = vld [vmem:[#allocation2 + $0x88] sm:$0xff] }
  0x50   : > { %1410 = vmatprep.subr.bf16.mxu1 %v1715_v0  ;;  %v290_v3 = vld [vmem:[#allocation2 + $0x90] sm:$0xff]  ;;  %v1314_v4 = vpack.c.bf16 %v289_v2, %v288_v1  ;;  %v291_v5 = vld [vmem:[#allocation2 + $0x98] sm:$0xff]  ;;  %v292_v7 = vld [vmem:[#allocation2 + $0xa0] sm:$0xff]  ;;  %vm306_vm0 = vcmask 1046528   ;;  %vm479_vm1 = vcmask 1045504   ;;  %vm1716_vm2 = vmmov 0  }
  0x51   : > { %s263_s7 = scalar_select %p262_p1, %s1701_s21, 1  ;;  %v1318_v6 = vpack.c.bf16 %v291_v5, %v290_v3  ;;  %v293_v8 = vld [vmem:[#allocation2 + $0xa8] sm:$0xff]  ;;  %v294_v12 = vld [vmem:[#allocation2 + $0xb0] sm:$0xff]  ;;  %v295_v13 = vld [vmem:[#allocation2 + $0xb8] sm:$0xff] }
  0x52   : > { %1315 = vmatprep.subr.bf16.mxu0 %v1314_v4  ;;  %v1322_v9 = vpack.c.bf16 %v293_v8, %v292_v7  ;;  %v1326_v17 = vpack.c.bf16 %v295_v13, %v294_v12  ;;  %v296_v18 = vld [vmem:[#allocation2 + $0xc0] sm:$0xff]  ;;  %v297_v19 = vld [vmem:[#allocation2 + $0xc8] sm:$0xff]  ;;  %v298_v21 = vld [vmem:[#allocation2 + $0xd0] sm:$0xff]  ;;  %s259_s16 = sand.u32 1, %s1693_s19   ;;  %s995_s27 = sshll.u32 %s1701_s21, 7 }
  0x53   : > { %s998_s11 = sshll.u32 %s263_s7, 4  ;;  %1317 = vmatpush3.bf16.msra.mxu0 %v1314_v4  ;;  %v1330_v20 = vpack.c.bf16 %v297_v19, %v296_v18  ;;  %v299_v22 = vld [vmem:[#allocation2 + $0xd8] sm:$0xff]  ;;  %v609_v23 = vld [vmem:[#allocation5 + $0x80] sm:$0xff]  ;;  %v610_v25 = vld [vmem:[#allocation5 + $0x88] sm:$0xff]  ;;  %s988_s17 = sshll.u32 %s259_s16, 3 }
  0x54   : > { %s266_s8 = scalar_lea.vmem %s1996_s0, %s998_s11  ;;  %1319 = vmatprep.subr.bf16.mxu0 %v1318_v6  ;;  %v1334_v24 = vpack.c.bf16 %v299_v22, %v298_v21  ;;  %v611_v26 = vld [vmem:[#allocation5 + $0x90] sm:$0xff]  ;;  %v612_v27 = vld [vmem:[#allocation5 + $0x98] sm:$0xff]  ;;  %v300_v28 = vld [vmem:[#allocation2 + $0xe0] sm:$0xff]  ;;  %v1411_v30 = vpack.c.bf16 %v610_v25, %v609_v23  ;;  %s261_s29 = scalar_lea.vmem [#allocation7], %s988_s17 }
  0x55   : > { %v1885_v10 = vld [vmem:[%s266_s8] sm:$0xff]  ;;  %v1887_v11 = vld [vmem:[%s266_s8 + $0x8] sm:$0xf]  ;;  %v1414_v31 = vpack.c.bf16 %v612_v27, %v611_v26  ;;  %v302_v35 = vld [vmem:[#allocation2 + $0xf0] sm:$0xff]  ;;  %s887_s10 = sshll.u32 %s261_s29, 4  ;;  %s1949_s7 = scalar_lea.hbm %s2001_s5, %s995_s27  ;;  %s1951_s10 = int_to_ptr.vmem [resolvable:$true] %s887_s10 }
  0x56   : > { %v307_v14 = vrot.slane %v1885_v10, 1  ;;  %v308_v15 = vrot.slane %v1887_v11, 1  ;;  %v301_v29 = vld [vmem:[#allocation2 + $0xe8] sm:$0xff]  ;;  %1412 = vmatpush3.bf16.msra.mxu1 %v1411_v30  ;;  %v613_v33 = vld [vmem:[#allocation5 + $0xa0] sm:$0xff]  ;;  %v303_v36 = vld [vmem:[#allocation2 + $0xf8] sm:$0xff]  ;;  %s873_s11 = scalar_lea.sflag [#allocation4], %s259_s16 }
  0x57   : > { %1321 = vmatpush3.bf16.msra.mxu0 %v1318_v6  ;;  %v1338_v32 = vpack.c.bf16 %v301_v29, %v300_v28  ;;  %1413 = vmatprep.subr.bf16.mxu1 %v1715_v0  ;;  %v614_v34 = vld [vmem:[#allocation5 + $0xa8] sm:$0xff]  ;;  %v1342_v38 = vpack.c.bf16 %v303_v36, %v302_v35  ;;  %v615_v39 = vld [vmem:[#allocation5 + $0xb0] sm:$0xff]  ;;  %v616_v40 = vld [vmem:[#allocation5 + $0xb8] sm:$0xff]  ;;  %s1623_s13 = scalar_lea.vmem %s1951_s10, 128  ;;  %p2015_p8 = scmp.ne.s32.totalorder %s2008_s28, 0 }
  0x58   : > { %v309_v16 = vsel %vm306_vm0, %v307_v14, %v308_v15  ;;  %1323 = vmatprep.subr.bf16.mxu0 %v1322_v9  ;;  %v1417_v37 = vpack.c.bf16 %v614_v34, %v613_v33  ;;  %v271_v41 = vld [vmem:[#allocation2] sm:$0xff]  ;;  %v272_v42 = vld [vmem:[#allocation2 + $0x8] sm:$0xff]  ;;  %v1420_v43 = vpack.c.bf16 %v616_v40, %v615_v39  ;;  %v273_v45 = vld [vmem:[#allocation2 + $0x10] sm:$0xff]  ;;  %v480_v14 = vrot.slane %v1885_v10, 2  ;;  %p1624_p13 = scmp.ne.s32.totalorder %s1951_s10, %s1623_s13  ;;  %s1718_s21 = smov [#allocation7]  }
  0x59   : > { %1136 = vmatprep.mubr.f32.mxu0 %v309_v16  ;;  %v1346_v44 = vpack.c.bf16 %v272_v42, %v271_v41  ;;  %v274_v46 = vld [vmem:[#allocation2 + $0x18] sm:$0xff]  ;;  %v617_v47 = vld [vmem:[#allocation5 + $0xc0] sm:$0xff]  ;;  %v618_v48 = vld [vmem:[#allocation5 + $0xc8] sm:$0xff]  ;;  %v1717_v42 = vmov 0.0   ;;  %s1627_s9 = sshll.u32 %s1718_s21, 4  ;;  %s1628_s9 = int_to_ptr.vmem [resolvable:$false] %s1627_s9 }
  0x5a   : > { %1415 = vmatpush3.bf16.msra.mxu1 %v1414_v31  ;;  %v1350_v49 = vpack.c.bf16 %v274_v46, %v273_v45  ;;  %v275_v50 = vld [vmem:[#allocation2 + $0x20] sm:$0xff]  ;;  %v1423_v51 = vpack.c.bf16 %v618_v48, %v617_v47  ;;  %v276_v52 = vld [vmem:[#allocation2 + $0x28] sm:$0xff]  ;;  %v619_v53 = vld [vmem:[#allocation5 + $0xd0] sm:$0xff]  ;;  %1241 = vmatprep.mubr.msk.f32.mxu1 %vm1716_vm2, %v1717_v42  ;;  %p1625_p10 = pnand %p1624_p13, %p2015_p8  ;;  %s1629_s8 = scalar_lea.vmem %s1628_s9, 256 }
  0x5b   : > { %1325 = vmatpush3.bf16.msra.mxu0 %v1322_v9  ;;  %1416 = vmatprep.subr.bf16.mxu1 %v1715_v0  ;;  %v620_v54 = vld [vmem:[#allocation5 + $0xd8] sm:$0xff]  ;;  %v1354_v55 = vpack.c.bf16 %v276_v52, %v275_v50  ;;  %v277_v57 = vld [vmem:[#allocation2 + $0x30] sm:$0xff]  ;;  %v279_v60 = vld [vmem:[#allocation2 + $0x40] sm:$0xff]  ;;  %p1630_p2 = scmp.lt.s32.totalorder %s1951_s10, %s1628_s9  ;;  %p1631_p3 = scmp.lt.s32.totalorder %s1629_s8, %s1623_s13 }
  0x5c   : > { %1327 = vmatprep.subr.bf16.mxu0 %v1326_v17  ;;  %v1426_v56 = vpack.c.bf16 %v620_v54, %v619_v53  ;;  %v278_v58 = vld [vmem:[#allocation2 + $0x38] sm:$0xff]  ;;  %v280_v61 = vld [vmem:[#allocation2 + $0x48] sm:$0xff]  ;;  %v281_v63 = vld [vmem:[#allocation2 + $0x50] sm:$0xff]  ;;  %p1626_p11 = pneg %p1625_p10 }
  0x5d   : > { %v1358_v59 = vpack.c.bf16 %v278_v58, %v277_v57  ;;  %v1362_v62 = vpack.c.bf16 %v280_v61, %v279_v60  ;;  %v282_v1 = vld [vmem:[#allocation2 + $0x58] sm:$0xff]  ;;  %v283_v3 = vld [vmem:[#allocation2 + $0x60] sm:$0xff]  ;;  %v284_v4 = vld [vmem:[#allocation2 + $0x68] sm:$0xff]  ;;  %p1632_p5 = por %p1631_p3, %p1630_p2 }
  0x5e   : > { %1418 = vmatpush3.bf16.msra.mxu1 %v1417_v37  ;;  %v1366_v2 = vpack.c.bf16 %v282_v1, %v281_v63  ;;  %v1370_v5 = vpack.c.bf16 %v284_v4, %v283_v3  ;;  %v285_v6 = vld [vmem:[#allocation2 + $0x70] sm:$0xff]  ;;  %v286_v7 = vld [vmem:[#allocation2 + $0x78] sm:$0xff]  ;;  %v463_v9 = vld [vmem:[#allocation2 + $0x100] sm:$0xff] }
  0x5f   : > { %1329 = vmatpush3.bf16.msra.mxu0 %v1326_v17  ;;  %1419 = vmatprep.subr.bf16.mxu1 %v1715_v0  ;;  %v1374_v8 = vpack.c.bf16 %v286_v7, %v285_v6  ;;  %v464_v12 = vld [vmem:[#allocation2 + $0x108] sm:$0xff]  ;;  %v465_v16 = vld [vmem:[#allocation2 + $0x110] sm:$0xff]  ;;  %v466_v17 = vld [vmem:[#allocation2 + $0x118] sm:$0xff]  ;;  %p1633_p6 = pnand %p1632_p5, %p1626_p11 }
  0x60   : > { %1331 = vmatprep.subr.bf16.mxu0 %v1330_v20  ;;  %v1378_v13 = vpack.c.bf16 %v464_v12, %v463_v9  ;;  %v1382_v18 = vpack.c.bf16 %v466_v17, %v465_v16  ;;  %v468_v21 = vld [vmem:[#allocation2 + $0x128] sm:$0xff]  ;;  %v469_v23 = vld [vmem:[#allocation2 + $0x130] sm:$0xff]  ;;  %v471_v25 = vld [vmem:[#allocation2 + $0x140] sm:$0xff] }
  0x61   : > { %v472_v26 = vld [vmem:[#allocation2 + $0x148] sm:$0xff]  ;;  %v473_v28 = vld [vmem:[#allocation2 + $0x150] sm:$0xff]  ;;  %v474_v29 = vld [vmem:[#allocation2 + $0x158] sm:$0xff] }
  0x62   : > { %1421 = vmatpush3.bf16.msra.mxu1 %v1420_v43  ;;  %v1394_v27 = vpack.c.bf16 %v472_v26, %v471_v25  ;;  %v1398_v30 = vpack.c.bf16 %v474_v29, %v473_v28  ;;  %v476_v31 = vld [vmem:[#allocation2 + $0x168] sm:$0xff]  ;;  %v477_v33 = vld [vmem:[#allocation2 + $0x170] sm:$0xff]  ;;  %v478_v34 = vld [vmem:[#allocation2 + $0x178] sm:$0xff]  ;;  %v573_v43 = vlaneseq }
  0x63   : > { %1333 = vmatpush3.bf16.msra.mxu0 %v1330_v20  ;;  %1422 = vmatprep.subr.bf16.mxu1 %v1715_v0  ;;  %v467_v20 = vld [vmem:[#allocation2 + $0x120] sm:$0xff]  ;;  %v1406_v35 = vpack.c.bf16 %v478_v34, %v477_v33  ;;  %v622_v37 = vld [vmem:[#allocation5 + $0xe8] sm:$0xff]  ;;  %v623_v39 = vld [vmem:[#allocation5 + $0xf0] sm:$0xff] }
  0x64   : > { %1335 = vmatprep.subr.bf16.mxu0 %v1334_v24  ;;  %v1386_v22 = vpack.c.bf16 %v468_v21, %v467_v20  ;;  %v621_v36 = vld [vmem:[#allocation5 + $0xe0] sm:$0xff]  ;;  %v624_v40 = vld [vmem:[#allocation5 + $0xf8] sm:$0xff]  ;;  %v594_v1 = vld [vmem:[#allocation5 + $0x10] sm:$0xff] }
  0x65   : > { %v1432_v41 = vpack.c.bf16 %v624_v40, %v623_v39  ;;  %v991_v46 = vld [vmem:[%s1998_s2] ss:$0 sm:$0xff]  ;;  %v597_v7 = vld [vmem:[#allocation5 + $0x28] sm:$0xff]  ;;  %v598_v9 = vld [vmem:[#allocation5 + $0x30] sm:$0xff] }
  0x66   : > { %1424 = vmatpush3.bf16.msra.mxu1 %v1423_v51  ;;  %v596_v6 = vld [vmem:[#allocation5 + $0x20] sm:$0xff]  ;;  %v599_v12 = vld [vmem:[#allocation5 + $0x38] sm:$0xff]  ;;  %v602_v17 = vld [vmem:[#allocation5 + $0x50] sm:$0xff] }
  0x67   : > { %1337 = vmatpush3.bf16.msra.mxu0 %v1334_v24  ;;  %1425 = vmatprep.subr.bf16.mxu1 %v1715_v0  ;;  %v604_v20 = vld [vmem:[#allocation5 + $0x60] sm:$0xff]  ;;  %v605_v21 = vld [vmem:[#allocation5 + $0x68] sm:$0xff]  ;;  %v774_v28 = vld [vmem:[#allocation5 + $0x110] sm:$0xff] }
  0x68   : > { %1339 = vmatprep.subr.bf16.mxu0 %v1338_v32  ;;  %v772_v25 = vld [vmem:[#allocation5 + $0x100] sm:$0xff]  ;;  %v773_v26 = vld [vmem:[#allocation5 + $0x108] sm:$0xff]  ;;  %v775_v29 = vld [vmem:[#allocation5 + $0x118] sm:$0xff] }
  0x69   : > { %v778_v33 = vld [vmem:[#allocation5 + $0x130] sm:$0xff]  ;;  %v779_v34 = vld [vmem:[#allocation5 + $0x138] sm:$0xff] }
  0x6a   : > { %1427 = vmatpush3.bf16.msra.mxu1 %v1426_v56  ;;  %v593_v56 = vld [vmem:[#allocation5 + $0x8] sm:$0xff]  ;;  %v782_v39 = vld [vmem:[#allocation5 + $0x150] sm:$0xff]  ;;  %v783_v40 = vld [vmem:[#allocation5 + $0x158] sm:$0xff] }
  0x6b   : > { %1341 = vmatpush3.bf16.msra.mxu0 %v1338_v32  ;;  %1428 = vmatprep.subr.bf16.mxu1 %v1715_v0 }
  0x6c   : > { %1343 = vmatprep.subr.bf16.mxu0 %v1342_v38 }
  0x6f   : > { %1345 = vmatpush3.bf16.msra.mxu0 %v1342_v38  ;;  %v1429_v38 = vpack.c.bf16 %v622_v37, %v621_v36  ;;  %v780_v36 = vld [vmem:[#allocation5 + $0x140] sm:$0xff]  ;;  %v781_v37 = vld [vmem:[#allocation5 + $0x148] sm:$0xff] }
  0x70   : > { %1347 = vmatprep.subr.bf16.mxu0 %v1346_v44 }
  0x71   : > { %1430 = vmatpush3.bf16.msra.mxu1 %v1429_v38  ;;  %v1471_v38 = vpack.c.bf16 %v781_v37, %v780_v36 }
  0x72   : > { %1137 = vmatmul.mubr.f32.vlgmr.msra.gmra.mrb[0].mxu0 %v308_v15  ;;  %v481_v15 = vrot.slane %v1887_v11, 2  ;;  %1431 = vmatprep.subr.bf16.mxu1 %v1715_v0 }
  0x73   : > { %1349 = vmatpush3.bf16.msra.mxu0 %v1346_v44  ;;  %1171 = vmatprep.mubr.f32.mxu0 %v1885_v10  ;;  %v470_v10 = vld [vmem:[#allocation2 + $0x138] sm:$0xff]  ;;  %v574_v44 = vshrl.u32 %v573_v43, 7  ;;  %v785_v43 = vld [vmem:[#allocation5 + $0x168] sm:$0xff] }
  0x74   : > { %1351 = vmatprep.subr.bf16.mxu0 %v1350_v49  ;;  %v482_v19 = vsel %vm479_vm1, %v480_v14, %v481_v15  ;;  %v1390_v24 = vpack.c.bf16 %v470_v10, %v469_v23  ;;  %v600_v14 = vld [vmem:[#allocation5 + $0x40] sm:$0xff]  ;;  %v606_v23 = vld [vmem:[#allocation5 + $0x70] sm:$0xff]  ;;  %v607_v10 = vld [vmem:[#allocation5 + $0x78] sm:$0xff] }
  0x75   : > { %1433 = vmatpush3.bf16.msra.mxu1 %v1432_v41  ;;  %v575_v45 = vadd.s32 8, %v574_v44  ;;  %v1910_v48 = vadd.s32 4294967295, %v574_v44  ;;  %v1474_v41 = vpack.c.bf16 %v783_v40, %v782_v39 }
  0x76   : > { %1434 = vmatprep.subr.bf16.mxu1 %v1715_v0 }
  0x77   : > { %1353 = vmatpush3.bf16.msra.mxu0 %v1350_v49  ;;  %v579_v47 = vadd.s32 4294967295, %v575_v45  ;;  %vm580_vm4 = vcmp.ge.s32.totalorder %v1910_v48, 0  ;;  %v786_v45 = vld [vmem:[#allocation5 + $0x170] sm:$0xff] }
  0x78   : > { %1355 = vmatprep.subr.bf16.mxu0 %v1354_v55 }
  0x79   : > { %vm583_vm3 = vcmp.lt.s32.totalorder %v579_v47, 8 }
  0x7b   : > { %1357 = vmatpush3.bf16.msra.mxu0 %v1354_v55  ;;  %v592_v55 = vld [vmem:[#allocation5] sm:$0xff] }
  0x7c   : > { %1359 = vmatprep.subr.bf16.mxu0 %v1358_v59  ;;  %v1435_v63 = vpack.c.bf16 %v593_v56, %v592_v55 }
  0x7f   : > { %1361 = vmatpush3.bf16.msra.mxu0 %v1358_v59 }
  0x80   : > { %1363 = vmatprep.subr.bf16.mxu0 %v1362_v62 }
  0x83   : > { %1365 = vmatpush3.bf16.msra.mxu0 %v1362_v62 }
  0x84   : > { %1367 = vmatprep.subr.bf16.mxu0 %v1366_v2 }
  0x87   : > { %1369 = vmatpush3.bf16.msra.mxu0 %v1366_v2  ;;  %v595_v2 = vld [vmem:[#allocation5 + $0x18] sm:$0xff] }
  0x88   : > { %1371 = vmatprep.subr.bf16.mxu0 %v1370_v5 }
  0x8b   : > { %1373 = vmatpush3.bf16.msra.mxu0 %v1370_v5  ;;  %v1438_v5 = vpack.c.bf16 %v595_v2, %v594_v1 }
  0x8c   : > { %1375 = vmatprep.subr.bf16.mxu0 %v1374_v8 }
  0x8f   : > { %1377 = vmatpush3.bf16.msra.mxu0 %v1374_v8  ;;  %v1441_v8 = vpack.c.bf16 %v597_v7, %v596_v6 }
  0x90   : > { %1379 = vmatprep.subr.bf16.mxu0 %v1378_v13 }
  0x92   : > { %1172 = vmatmul.mubr.f32.vlgmr.msra.gmra.mrb[0].mxu0 %v1887_v11  ;;  %v475_v11 = vld [vmem:[#allocation2 + $0x160] sm:$0xff] }
  0x93   : > { %1381 = vmatpush3.bf16.msra.mxu0 %v1378_v13  ;;  %1206 = vmatprep.mubr.f32.mxu0 %v482_v19  ;;  %v1402_v32 = vpack.c.bf16 %v476_v31, %v475_v11  ;;  %v1444_v13 = vpack.c.bf16 %v599_v12, %v598_v9  ;;  %v776_v11 = vld [vmem:[#allocation5 + $0x120] sm:$0xff]  ;;  %v777_v31 = vld [vmem:[#allocation5 + $0x128] sm:$0xff] }
  0x94   : > { %1383 = vmatprep.subr.bf16.mxu0 %v1382_v18 }
  0x97   : > { %1385 = vmatpush3.bf16.msra.mxu0 %v1382_v18  ;;  %v603_v18 = vld [vmem:[#allocation5 + $0x58] sm:$0xff] }
  0x98   : > { %1387 = vmatprep.subr.bf16.mxu0 %v1386_v22  ;;  %v1450_v19 = vpack.c.bf16 %v603_v18, %v602_v17 }
  0x9b   : > { %1389 = vmatpush3.bf16.msra.mxu0 %v1386_v22  ;;  %v1453_v22 = vpack.c.bf16 %v605_v21, %v604_v20 }
  0x9c   : > { %1391 = vmatprep.subr.bf16.mxu0 %v1390_v24 }
  0x9f   : > { %1393 = vmatpush3.bf16.msra.mxu0 %v1390_v24  ;;  %v1456_v24 = vpack.c.bf16 %v607_v10, %v606_v23 }
  0xa0   : > { %1395 = vmatprep.subr.bf16.mxu0 %v1394_v27 }
  0xa3   : > { %1397 = vmatpush3.bf16.msra.mxu0 %v1394_v27  ;;  %v1459_v27 = vpack.c.bf16 %v773_v26, %v772_v25 }
  0xa4   : > { %1399 = vmatprep.subr.bf16.mxu0 %v1398_v30 }
  0xa7   : > { %1401 = vmatpush3.bf16.msra.mxu0 %v1398_v30  ;;  %v1462_v30 = vpack.c.bf16 %v775_v29, %v774_v28 }
  0xa8   : > { %1403 = vmatprep.subr.bf16.mxu0 %v1402_v32 }
  0xab   : > { %1405 = vmatpush3.bf16.msra.mxu0 %v1402_v32  ;;  %v1465_v32 = vpack.c.bf16 %v777_v31, %v776_v11 }
  0xac   : > { %1407 = vmatprep.subr.bf16.mxu0 %v1406_v35 }
  0xaf   : > { %1409 = vmatpush3.bf16.msra.mxu0 %v1406_v35  ;;  %v1468_v35 = vpack.c.bf16 %v779_v34, %v778_v33 }
  0xb2   : > { %1207 = vmatmul.mubr.f32.vlgmr.msra.gmra.mrb[0].mxu0 %v481_v15  ;;  %v601_v15 = vld [vmem:[#allocation5 + $0x48] sm:$0xff] }
  0xb3   : > { %v1447_v16 = vpack.c.bf16 %v601_v15, %v600_v14 }
 0x185   : > { %v1208_v49 = vpop.f32.mrb[0].mxu0 }
 0x186   : > { %v570_v50 = vadd.f32 %v1208_v49, %v991_v46  ;;  %v551_v51 = vpop.f32.mrb[1].mxu0 }
 0x187   : > { %v569_v52 = vadd.f32 %v991_v46, %v551_v51  ;;  %v787_v46 = vld [vmem:[#allocation5 + $0x178] sm:$0xff] }
 0x188   : > { %v572_v53 = vmax.f32 %v570_v50, 0.0  ;;  %v1480_v47 = vpack.c.bf16 %v787_v46, %v786_v45 }
 0x189   : > { %v571_v54 = vmax.f32 %v569_v52, 0.0 }
 0x18a   : > { %v591_v57 = vsel %vm583_vm3, %v572_v53, 0.0 }
 0x18b   : > { %v628_v58 = vrot.slane %v591_v57, 1  ;;  %v789_v59 = vrot.slane %v591_v57, 2  ;;  %v590_v60 = vsel %vm580_vm4, %v571_v54, 0.0 }
 0x18c   : > { %v627_v61 = vrot.slane %v590_v60, 1  ;;  %v788_v62 = vrot.slane %v590_v60, 2 }
 0x18e   : > { %v629_v3 = vsel %vm306_vm0, %v627_v61, %v628_v58  ;;  %v1917_v4 = vsel %vm479_vm1, %v788_v62, %v789_v59 }
 0x18f   : > { %1242 = vmatmul.mubr.f32.vlgmr.msra.gmra.mrb[0].mxu1 %v629_v3 }
 0x190   : > { %1436 = vmatpush3.bf16.msra.mxu1 %v1435_v63  ;;  %1276 = vmatprep.mubr.msk.f32.mxu1 %vm1716_vm2, %v1717_v42 }
 0x191   : > { %1437 = vmatprep.subr.bf16.mxu1 %v1715_v0 }
 0x194   : > { %1439 = vmatpush3.bf16.msra.mxu1 %v1438_v5 }
 0x195   : > { %1440 = vmatprep.subr.bf16.mxu1 %v1715_v0 }
 0x198   : > { %1442 = vmatpush3.bf16.msra.mxu1 %v1441_v8 }
 0x199   : > { %1443 = vmatprep.subr.bf16.mxu1 %v1715_v0 }
 0x19c   : > { %1445 = vmatpush3.bf16.msra.mxu1 %v1444_v13 }
 0x19d   : > { %1446 = vmatprep.subr.bf16.mxu1 %v1715_v0 }
 0x1a0   : > { %1448 = vmatpush3.bf16.msra.mxu1 %v1447_v16 }
 0x1a1   : > { %1449 = vmatprep.subr.bf16.mxu1 %v1715_v0 }
 0x1a4   : > { %1451 = vmatpush3.bf16.msra.mxu1 %v1450_v19 }
 0x1a5   : > { %1452 = vmatprep.subr.bf16.mxu1 %v1715_v0 }
 0x1a8   : > { %1454 = vmatpush3.bf16.msra.mxu1 %v1453_v22 }
 0x1a9   : > { %1455 = vmatprep.subr.bf16.mxu1 %v1715_v0 }
 0x1ac   : > { %1457 = vmatpush3.bf16.msra.mxu1 %v1456_v24 }
 0x1ad   : > { %1458 = vmatprep.subr.bf16.mxu1 %v1715_v0 }
 0x1af   : > { %1277 = vmatmul.mubr.msk.f32.vlgmr.msra.gmra.mrb[2].mxu1 %vm580_vm4, %v571_v54  ;;  %v993_v54 = vld [vmem:[%s2000_s4] ss:$0 sm:$0xff] }
 0x1b0   : > { %1460 = vmatpush3.bf16.msra.mxu1 %v1459_v27  ;;  %1311 = vmatprep.mubr.msk.f32.mxu1 %vm1716_vm2, %v1717_v42  ;;  %v784_v42 = vld [vmem:[#allocation5 + $0x160] sm:$0xff] }
 0x1b1   : > { %1461 = vmatprep.subr.bf16.mxu1 %v1715_v0  ;;  %v1477_v44 = vpack.c.bf16 %v785_v43, %v784_v42 }
 0x1b4   : > { %1463 = vmatpush3.bf16.msra.mxu1 %v1462_v30 }
 0x1b5   : > { %1464 = vmatprep.subr.bf16.mxu1 %v1715_v0 }
 0x1b8   : > { %1466 = vmatpush3.bf16.msra.mxu1 %v1465_v32 }
 0x1b9   : > { %1467 = vmatprep.subr.bf16.mxu1 %v1715_v0 }
 0x1bc   : > { %1469 = vmatpush3.bf16.msra.mxu1 %v1468_v35 }
 0x1bd   : > { %1470 = vmatprep.subr.bf16.mxu1 %v1715_v0 }
 0x1c0   : > { %1472 = vmatpush3.bf16.msra.mxu1 %v1471_v38 }
 0x1c1   : > { %1473 = vmatprep.subr.bf16.mxu1 %v1715_v0 }
 0x1c4   : > { %1475 = vmatpush3.bf16.msra.mxu1 %v1474_v41 }
 0x1c5   : > { %1476 = vmatprep.subr.bf16.mxu1 %v1715_v0 }
 0x1c8   : > { %1478 = vmatpush3.bf16.msra.mxu1 %v1477_v44 }
 0x1c9   : > { %1479 = vmatprep.subr.bf16.mxu1 %v1715_v0 }
 0x1cc   : > { %1481 = vmatpush3.bf16.msra.mxu1 %v1480_v47 }
 0x1cf   : > { %1312 = vmatmul.mubr.f32.vlgmr.msra.gmra.mrb[4].mxu1 %v1917_v4 }
 0x262   : > { %v697_v48 = vpop.f32.mrb[0].mxu1 }
 0x263   : > { %v1243_v49 = vpop.f32.mrb[1].mxu1 }
 0x282   : > { %v767_v50 = vpop.f32.mrb[2].mxu1 }
 0x283   : > { %v768_v51 = vadd.f32 %v767_v50, %v697_v48  ;;  %v1278_v52 = vpop.f32.mrb[3].mxu1 }
 0x2a2   : > { %v858_v53 = vpop.f32.mrb[4].mxu1 }
 0x2a3   : > { %v862_v0 = vadd.f32 %v858_v53, %v768_v51  ;;  %v1313_v55 = vpop.f32.mrb[5].mxu1 }
 0x2a5   : > { %v870_v56 = vadd.f32 %v993_v54, %v862_v0 }
 0x2a7   : > { %871 = vst [vmem:[%s261_s29] sm:$0xff] %v870_v56 }
 0x2a8   : > { %1636 = shalt.err (!%p1633_p6)
}
 0x2a9   : > { %s1637_s12 = scalar_lea.hbm %s1949_s7, 128  ;;  %s1641_s17 = scalar_lea.hbm %s2001_s5, 256 }
 0x2aa   : > { %p1638_p7 = scmp.ne.s32.totalorder %s1949_s7, %s1637_s12  ;;  %p1642_p0 = scmp.lt.u32.totalorder %s1949_s7, %s2001_s5 }
 0x2ab   : > { %p1643_p4 = scmp.lt.u32.totalorder %s1641_s17, %s1637_s12  ;;  %p1645_p13 = scmp.lt.u32.totalorder %s1637_s12, %s1949_s7 }
 0x2ac   : > { %p1639_p9 = pnand %p1638_p7, %p2015_p8 }
 0x2ad   : > { %p1644_p1 = por %p1643_p4, %p1642_p0 }
 0x2ae   : > { %p1640_p12 = pneg %p1639_p9 }
 0x2af   : > { %p1646_p10 = por %p1645_p13, %p1644_p1 }
 0x2b1   : > { %p1647_p11 = pnand %p1646_p10, %p1640_p12 }
 0x2b3   : > { %1650 = shalt.err (!%p1647_p11)
}
 0x2b4   : > { %1494 = dma.vmem_to_hbm [thread:$0]  (%p2015_p8), %s1951_s10, 128, %s1949_s7, %s873_s11  }
 0x2b5 PF: > { %p1511_p2 = scmp.ge.s32.totalorder %s1709_s23, 2  ;;  %s899_s27 = sand.u32 1, %s1689_s18  }
 0x2b6   : > { %p2016_p3 = scmp.ne.s32.totalorder %s2009_s30, 0  ;;  %s900_s29 = scalar_lea.sflag [#allocation4], %s899_s27 }
 0x2b8   : > { %p1504_p5 = pnand %p1511_p2, %p2016_p3 }
 0x2ba   : > { %1684 = dma.done.wait (!%p1504_p5), %s900_s29, 128  }
 0x2bb   : > { %1686 = vsyncadd (!%p1504_p5), %s900_s29, 4294967168  ;;  %s20_s23 = sadd.s32 1, %s1709_s23   ;;  %s2017_s28 = sld [smem:[#allocation11_spill]] }
 0x2bc   : > { %p17_p6 = scmp.ge.s32.totalorder %s20_s23, 4   ;;  %s2018_s18 = smov %s1693_s19 }
 0x2bd   : > { %s2019_s19 = smov %s1697_s20  ;;  %s2020_s20 = smov %s1802_s6 }
 0x2be   : > { %s2021_s21 = smov %s1705_s22  ;;  %19 = sbr.rel (!%p17_p6) target bundleno = 6 (0x6), region = 89 }
 0x2c1   : > { %s2022_s22 = smov %s2017_s28 }
 0x2c5   :  { %905 = vsyncpa [#allocation3], 1 }
 0x2c6   :  { %907 = vsyncpa [#allocation3 + $0x1], 1 }
 0x2c7   :  { %908 = vsyncpa [#allocation6], 1 }
 0x2c8   :  { %909 = vsyncpa [#allocation4], 1 }
 0x2c9   :  { %911 = vsyncpa [#allocation4 + $0x1], 1 }

</bundles_post_ra>
